<compile_context>
chip_gen: v6e
topology: v6e:2x2x1
jax: 0.10.0
libtpu: 0.0.40
codegen_flags: <defaults>
</compile_context>

<pallas_src>
import functools

import numpy as np
import jax
import jax.numpy as jnp
from jax.experimental import pallas as pl
from jax.experimental.pallas import tpu as pltpu


# ---------------------------------------------------------------------------
# Pallas kernel: fused (basic_block -> theta_f/theta_b) spectral pipeline
# ---------------------------------------------------------------------------
def _parallel_block_kernel(x_ref, wf_ref, gre_ref, gim_ref, dr_ref, di_ref, fb_ref):
    # x_ref  : (tb, L, E)   bf16  batch tile of the block input, native layout
    # wf_ref : (E, 2M)      bf16  [Re(W_basic) | Im(W_basic)]
    # gre_ref: (L, 2M)      f32   lane-dense analysis table [ fc | sn]
    # gim_ref: (L, 2M)      f32   lane-dense analysis table [-sn | fc]
    # dr_ref : (2M, 2L)     f32   [Cr;Cr] @ [T_f | T_b]  (synthesis ∘ rank-1 f/b)
    # di_ref : (2M, 2L)     f32   [Ci;Ci] @ [T_f | T_b]
    # fb_ref : (tb, 1, 2L)  f32   channel-constant output rows: [f | b]
    tb, L, E = x_ref.shape
    m2 = wf_ref.shape[1]

    # 1) E-channel contraction of the basic_block layer on the MXU
    #    (bf16 inputs, f32 accumulation).  Leading-dim reshapes only.
    p = jnp.dot(x_ref[...].reshape(tb * L, E), wf_ref[...],
                preferred_element_type=jnp.float32)                 # (tb*L, 2M)
    p3 = p.reshape(tb, L, m2)                                       # (tb, L, 2M)

    # 2) Batched, lane-dense cos/sin combine: one VPU multiply + one XLU
    #    sublane reduction per table (no per-batch unroll, no concatenates).
    a = jnp.sum(p3 * gre_ref[...][None, :, :], axis=1)              # (tb, 2M)
    c = jnp.sum(p3 * gim_ref[...][None, :, :], axis=1)              # (tb, 2M)

    # 3) Truncated irfft of the basic layer fused with the rank-1 theta_f /
    #    theta_b layers: two small MXU matmuls, one lane-dense store.
    fb_ref[:, 0, :] = (
        jnp.dot(a, dr_ref[...], preferred_element_type=jnp.float32)
        + jnp.dot(c, di_ref[...], preferred_element_type=jnp.float32))


# ---------------------------------------------------------------------------
# Host-side (cached) DFT basis construction
# ---------------------------------------------------------------------------
def _validate_index(index, L):
    if len(index) == 0:
        raise ValueError("empty frequency index list")
    if len(index) > L // 2 + 1 or max(index) >= L // 2 + 1:
        raise ValueError("index is incompatible with runtime sequence length L.")


@functools.lru_cache(maxsize=None)
def _dft_bases(L, index):
    """DFT analysis / synthesis tables for the truncated spectral conv.

    Analysis frequencies are index[m] (possibly a shuffled permutation);
    synthesis bins are m = 0..M-1 -- they differ whenever `index` is not the
    identity permutation.
    """
    M = len(index)
    n = np.arange(L, dtype=np.float64)

    k_in = np.asarray(index, dtype=np.float64)                      # (M,)
    th = 2.0 * np.pi * np.outer(n, k_in) / L                        # (L, M)
    fc = np.cos(th).astype(np.float32)
    sn = np.sin(th).astype(np.float32)

    m_out = np.arange(M, dtype=np.float64)                          # output bins
    herm = np.where((m_out == 0) | (2.0 * m_out == L), 1.0, 2.0)    # DC/Nyquist once
    ph = 2.0 * np.pi * np.outer(m_out, n) / L                       # (M, L)
    cr = (herm[:, None] * np.cos(ph) / L).astype(np.float32)
    ci = (-herm[:, None] * np.sin(ph) / L).astype(np.float32)
    return fc, sn, cr, ci


def _rank1_spectral_matrix(weights1, index, L):
    """(L, L) matrix T with y_out = y_in @ T for a SpectralConv1d applied to a
    channel-constant input.

    Exactness relies on the invariant that the previous SpectralConv1d output
    is constant over E (the torch slice assignment broadcasts a per-(b,h)
    complex scalar over the channel dim); under that invariant the E-channel
    contraction reduces to multiplying by sum_e W[e, m].
    """
    idx = tuple(int(i) for i in index)
    _validate_index(idx, L)
    fc, sn, cr, ci = (jnp.asarray(t) for t in _dft_bases(L, idx))
    w = weights1[0, :, 0, :]                                        # (E, M) complex
    wr = jnp.sum(jnp.real(w), axis=0)[None, :].astype(jnp.float32)  # (1, M)
    wi = jnp.sum(jnp.imag(w), axis=0)[None, :].astype(jnp.float32)  # (1, M)
    s_re = fc * wr + sn * wi                                        # (L, M)
    s_im = fc * wi - sn * wr                                        # (L, M)
    return jnp.dot(s_re, cr) + jnp.dot(s_im, ci)                    # (L, L)


def _prepare_operands(params, L, E):
    """Kernel operands: bf16 fused basic weights, lane-dense analysis tables,
    and the synthesis matrices with the rank-1 theta_f/theta_b layers folded in."""
    idx1 = tuple(int(i) for i in params["idx_basic"])
    _validate_index(idx1, L)
    w1 = params["w_basic"]
    if w1.shape[1] != E:
        raise ValueError("E must equal weights1.shape[1] (hard-coded 256 in torch).")
    fc1, sn1, cr1, ci1 = _dft_bases(L, idx1)

    # Lane-dense analysis tables: full-width [fc|sn] / [-sn|fc] (perf review #8).
    gre = jnp.asarray(np.concatenate([fc1, sn1], axis=1))           # (L, 2M)
    gim = jnp.asarray(np.concatenate([-sn1, fc1], axis=1))          # (L, 2M)

    # basic_block weights, fused real|imag, bf16 for the MXU (f32 accumulation
    # stays in the kernel; tables and combine remain f32).
    wmat = w1[0, :, 0, :]                                           # (E, M) complex
    wf = jnp.concatenate([jnp.real(wmat), jnp.imag(wmat)],
                         axis=1).astype(jnp.bfloat16)               # (E, 2M)

    # Rank-1 folded theta_f / theta_b layers, fused with the basic layer's
    # truncated-irfft synthesis:  [f|b] = A @ dr + C @ di.
    t_f = _rank1_spectral_matrix(params["w_f"], params["idx_f"], L)
    t_b = _rank1_spectral_matrix(params["w_b"], params["idx_b"], L)
    t_fb = jnp.concatenate([t_f, t_b], axis=1)                      # (L, 2L)
    c2r = jnp.asarray(np.concatenate([cr1, cr1], axis=0))           # (2M, L)
    c2i = jnp.asarray(np.concatenate([ci1, ci1], axis=0))           # (2M, L)
    dr = jnp.dot(c2r, t_fb)                                         # (2M, 2L)
    di = jnp.dot(c2i, t_fb)                                         # (2M, 2L)
    return wf, gre, gim, dr, di


def _pick_batch_tile(B, L, E):
    """Largest batch tile whose double-buffered bf16 x slab stays <= ~4 MiB,
    keeping the full pipeline well under v5e's 16 MiB / v7x's 32 MiB scoped VMEM."""
    rows_per_buf = max(1, (2 * 1024 * 1024) // (E * 2))   # bf16 rows per buffer
    max_tb = max(1, rows_per_buf // max(L, 1))
    if B <= max_tb:
        return B
    for tb in range(max_tb, 0, -1):
        if B % tb == 0:
            return tb
    return 1


# ---------------------------------------------------------------------------
# Parallel_Block: init + forward
# ---------------------------------------------------------------------------
def _make_index(seq_len, modes1, rng):
    """Mirror of SpectralConv1d.__init__ index selection (deterministic rng)."""
    if modes1 > 10000:
        modes2 = modes1 - 10000
        index0 = list(range(0, min(seq_len // 4, modes2 // 2)))
        index1 = list(range(len(index0), seq_len // 2))
        rng.shuffle(index1)
        index1 = index1[:min(seq_len // 4, modes2 // 2)]
        index = index0 + index1
        index.sort()
    elif modes1 > 1000:
        modes2 = modes1 - 1000
        index = list(range(0, seq_len // 2))
        rng.shuffle(index)
        index = index[:modes2]
    else:
        index = list(range(0, min(seq_len // 2, modes1)))
    return index


def _init_spectral_weights(key, in_channels, out_channels, M):
    scale = 1.0 / (in_channels * out_channels)
    kr, ki = jax.random.split(key)
    wr = scale * jax.random.uniform(kr, (1, 256, 1, M), dtype=jnp.float32)
    wi = scale * jax.random.uniform(ki, (1, 256, 1, M), dtype=jnp.float32)
    return (wr + 1j * wi).astype(jnp.complex64)


def init_parallel_block(key, inner_dim, out_dim, input_dim, heads=1, np_seed=0):
    """Mirror of Parallel_Block.__init__ (modes1 hard-coded to 1064)."""
    del out_dim  # unused by forward
    rng = np.random.RandomState(np_seed)
    idx_basic = _make_index(inner_dim * heads, 1064, rng)
    idx_b = _make_index(input_dim * heads, 1064, rng)
    idx_f = _make_index(input_dim * heads, 1064, rng)
    k1, k2, k3 = jax.random.split(key, 3)
    return dict(
        idx_basic=idx_basic, idx_b=idx_b, idx_f=idx_f,
        w_basic=_init_spectral_weights(k1, input_dim * heads, inner_dim * heads, len(idx_basic)),
        w_b=_init_spectral_weights(k2, inner_dim * heads, input_dim * heads, len(idx_b)),
        w_f=_init_spectral_weights(k3, inner_dim * heads, input_dim * heads, len(idx_f)),
    )


def parallel_block_forward(x, params):
    """Parallel_Block.forward; x is a (B, L, E) array or a tuple (x, y)."""
    if isinstance(x, tuple):
        x, y = x
    else:
        y = None
    if x.ndim == 4:
        if x.shape[2] != 1:
            raise ValueError("PyTorch forward is only well-defined for H == 1.")
        x = x[:, :, 0, :]
    B, L, E = x.shape

    wf, gre, gim, dr, di = _prepare_operands(params, L, E)
    m2 = wf.shape[1]                                   # 2M of the basic layer

    # bf16 copy of x for the MXU pass: halves HBM/VMEM traffic of the dominant
    # operand; f32 accumulation + f32 combine/synthesis preserve accuracy.
    x_bf = x.astype(jnp.bfloat16)

    tb = _pick_batch_tile(B, L, E)
    grid = (B // tb,)

    flops = 2 * B * L * E * m2 + 4 * B * L * m2 + 2 * 2 * B * m2 * (2 * L)
    bytes_accessed = (B * L * E * 2 + E * m2 * 2
                      + (2 * L * m2 + 2 * m2 * 2 * L) * 4 + B * 2 * L * 4)

    fb = pl.pallas_call(
        _parallel_block_kernel,
        out_shape=jax.ShapeDtypeStruct((B, 1, 2 * L), jnp.float32),
        grid_spec=pltpu.PrefetchScalarGridSpec(
            num_scalar_prefetch=0,
            grid=grid,
            in_specs=[
                pl.BlockSpec((tb, L, E), lambda i: (i, 0, 0)),      # x tile
                pl.BlockSpec((E, m2), lambda i: (0, 0)),            # wf
                pl.BlockSpec((L, m2), lambda i: (0, 0)),            # gre
                pl.BlockSpec((L, m2), lambda i: (0, 0)),            # gim
                pl.BlockSpec((m2, 2 * L), lambda i: (0, 0)),        # dr
                pl.BlockSpec((m2, 2 * L), lambda i: (0, 0)),        # di
            ],
            out_specs=pl.BlockSpec((tb, 1, 2 * L), lambda i: (i, 0, 0)),
        ),
        compiler_params=pltpu.CompilerParams(
            dimension_semantics=("parallel",),
            vmem_limit_bytes=32 * 1024 * 1024,
        ),
        cost_estimate=pl.CostEstimate(
            flops=flops, transcendentals=0, bytes_accessed=bytes_accessed),
    )(x_bf, wf, gre, gim, dr, di)                                   # (B, 1, 2L)

    # Channel-constant rows -> broadcast over E in the wrapper (fused by XLA).
    f = fb[:, 0, :L]
    b = fb[:, 0, L:]
    f_full = jnp.broadcast_to(f[:, :, None], (B, L, E)).astype(x.dtype)
    b_full = jnp.broadcast_to(b[:, :, None], (B, L, E)).astype(x.dtype)
    res = x - b_full
    if y is None:
        return res, f_full
    return res, y + f_full


# ---------------------------------------------------------------------------
# Pure-JAX reference (uses jnp.fft) for verification
# ---------------------------------------------------------------------------
def spectral_conv1d_reference(q, weights1, index):
    if q.ndim == 3:
        q = q[:, :, None, :]
    B, L, H, E = q.shape
    x = jnp.transpose(q, (0, 2, 3, 1)).astype(jnp.float32)          # (B, H, E, L)
    x_ft = jnp.fft.rfft(x, axis=-1)                                 # (B, H, E, L//2+1)
    out_ft = jnp.zeros((B, H, E, L // 2 + 1), dtype=jnp.complex64)
    for wi_, i in enumerate(index):
        s = jnp.einsum('bhi,hio->bho', x_ft[:, :, :, i], weights1[:, :, :, wi_])
        out_ft = out_ft.at[:, :, :, wi_].set(jnp.broadcast_to(s, (B, H, E)))
    yy = jnp.fft.irfft(out_ft, n=L, axis=-1)                        # (B, H, E, L)
    return jnp.transpose(yy[:, 0], (0, 2, 1))                       # (B, L, E)


def parallel_block_reference(x, params):
    if isinstance(x, tuple):
        x, y = x
    else:
        y = None
    x1 = spectral_conv1d_reference(x, params["w_basic"], params["idx_basic"])
    f = spectral_conv1d_reference(x1, params["w_f"], params["idx_f"])
    b = spectral_conv1d_reference(x1, params["w_b"], params["idx_b"])
    if y is None:
        return x - b, f
    return x - b, y + f


# ---------------------------------------------------------------------------
if __name__ == "__main__":
    # Small shapes consistent with the module.  E is forced to 256 by the
    # hard-coded weights1 shape (1, 256, 1, M); L must equal input_dim*heads
    # (== inner_dim*heads) so the construction-time frequency indices are valid
    # for the runtime sequence length.
    heads, input_dim, inner_dim, out_dim = 1, 16, 16, 16
    B, L, E = 2, 16, 256

    key = jax.random.PRNGKey(0)
    kp, kx = jax.random.split(key)
    params = init_parallel_block(kp, inner_dim, out_dim, input_dim, heads=heads)
    x = jax.random.normal(kx, (B, L, E), dtype=jnp.float32)

    out_res, out_f = jax.block_until_ready(parallel_block_forward(x, params))
    ref_res, ref_f = jax.block_until_ready(parallel_block_reference(x, params))

    assert out_res.shape == (B, L, E), out_res.shape
    assert out_f.shape == (B, L, E), out_f.shape
    for got, ref, name in ((out_res, ref_res, "x - b"), (out_f, ref_f, "f")):
        denom = max(1.0, float(jnp.max(jnp.abs(ref))))
        err = float(jnp.max(jnp.abs(got - ref)))
        if err > 5e-3 * denom:
            raise AssertionError(
                f"Pallas Parallel_Block mismatch on '{name}': max|err|={err}")
    print("KERNEL_OK")
</pallas_src>

<mosaic_0001>
module attributes {stable_mosaic.version = 11 : i64} {
  func.func @_parallel_block_kernel(%arg0: i32, %arg1: memref<2x16x256xbf16, #tpu.memory_space<vmem>>, %arg2: memref<256x16xbf16, #tpu.memory_space<vmem>>, %arg3: memref<16x16xf32, #tpu.memory_space<vmem>>, %arg4: memref<16x16xf32, #tpu.memory_space<vmem>>, %arg5: memref<16x32xf32, #tpu.memory_space<vmem>>, %arg6: memref<16x32xf32, #tpu.memory_space<vmem>>, %arg7: memref<2x1x32xf32, #tpu.memory_space<vmem>>) attributes {dimension_semantics = [#tpu.dimension_semantics<parallel>], iteration_bounds = array<i64: 1>, scalar_prefetch = 0 : i64, scratch_operands = 0 : i64, tpu.core_type = #tpu.core_type<tc>, window_params = [{transform_indices = @transform_0, window_bounds = array<i64: 2, 16, 256>}, {pipeline_mode = #tpu.pipeline_mode<synchronous>, transform_indices = @transform_1, window_bounds = array<i64: 256, 16>}, {pipeline_mode = #tpu.pipeline_mode<synchronous>, transform_indices = @transform_2, window_bounds = array<i64: 16, 16>}, {pipeline_mode = #tpu.pipeline_mode<synchronous>, transform_indices = @transform_3, window_bounds = array<i64: 16, 16>}, {pipeline_mode = #tpu.pipeline_mode<synchronous>, transform_indices = @transform_4, window_bounds = array<i64: 16, 32>}, {pipeline_mode = #tpu.pipeline_mode<synchronous>, transform_indices = @transform_5, window_bounds = array<i64: 16, 32>}, {transform_indices = @transform_6, window_bounds = array<i64: 2, 1, 32>}]} {
    %c0 = arith.constant 0 : index
    %c0_0 = arith.constant 0 : index
    %c0_1 = arith.constant 0 : index
    %0 = vector.load %arg1[%c0, %c0_0, %c0_1] : memref<2x16x256xbf16, #tpu.memory_space<vmem>>, vector<2x16x256xbf16>
    %1 = vector.shape_cast %0 : vector<2x16x256xbf16> to vector<32x256xbf16>
    %c0_2 = arith.constant 0 : index
    %c0_3 = arith.constant 0 : index
    %2 = vector.load %arg2[%c0_2, %c0_3] : memref<256x16xbf16, #tpu.memory_space<vmem>>, vector<256x16xbf16>
    %cst = arith.constant dense<0.000000e+00> : vector<32x16xf32>
    %3 = tpu.matmul %1, %2, %cst {dimension_numbers = #tpu.dot_dimension_numbers<[1], [0], [0], [1], [0, 0, 1, 1], [], []>} : vector<32x256xbf16>, vector<256x16xbf16>, vector<32x16xf32> -> vector<32x16xf32>
    %4 = vector.shape_cast %3 : vector<32x16xf32> to vector<2x16x16xf32>
    %c0_4 = arith.constant 0 : index
    %c0_5 = arith.constant 0 : index
    %5 = vector.load %arg3[%c0_4, %c0_5] : memref<16x16xf32, #tpu.memory_space<vmem>>, vector<16x16xf32>
    %6 = vector.shape_cast %5 : vector<16x16xf32> to vector<1x16x16xf32>
    %7 = vector.broadcast %6 : vector<1x16x16xf32> to vector<2x16x16xf32>
    %8 = arith.mulf %4, %7 : vector<2x16x16xf32>
    %cst_6 = arith.constant dense<0.000000e+00> : vector<2x16xf32>
    %9 = vector.multi_reduction <add>, %8, %cst_6 [1] : vector<2x16x16xf32> to vector<2x16xf32>
    %c0_7 = arith.constant 0 : index
    %c0_8 = arith.constant 0 : index
    %10 = vector.load %arg4[%c0_7, %c0_8] : memref<16x16xf32, #tpu.memory_space<vmem>>, vector<16x16xf32>
    %11 = vector.shape_cast %10 : vector<16x16xf32> to vector<1x16x16xf32>
    %12 = vector.broadcast %11 : vector<1x16x16xf32> to vector<2x16x16xf32>
    %13 = arith.mulf %4, %12 : vector<2x16x16xf32>
    %cst_9 = arith.constant dense<0.000000e+00> : vector<2x16xf32>
    %14 = vector.multi_reduction <add>, %13, %cst_9 [1] : vector<2x16x16xf32> to vector<2x16xf32>
    %c0_10 = arith.constant 0 : index
    %c0_11 = arith.constant 0 : index
    %15 = vector.load %arg5[%c0_10, %c0_11] : memref<16x32xf32, #tpu.memory_space<vmem>>, vector<16x32xf32>
    %cst_12 = arith.constant dense<0.000000e+00> : vector<2x32xf32>
    %16 = tpu.matmul %9, %15, %cst_12 {dimension_numbers = #tpu.dot_dimension_numbers<[1], [0], [0], [1], [0, 0, 1, 1], [], []>} : vector<2x16xf32>, vector<16x32xf32>, vector<2x32xf32> -> vector<2x32xf32>
    %c0_13 = arith.constant 0 : index
    %c0_14 = arith.constant 0 : index
    %17 = vector.load %arg6[%c0_13, %c0_14] : memref<16x32xf32, #tpu.memory_space<vmem>>, vector<16x32xf32>
    %cst_15 = arith.constant dense<0.000000e+00> : vector<2x32xf32>
    %18 = tpu.matmul %14, %17, %cst_15 {dimension_numbers = #tpu.dot_dimension_numbers<[1], [0], [0], [1], [0, 0, 1, 1], [], []>} : vector<2x16xf32>, vector<16x32xf32>, vector<2x32xf32> -> vector<2x32xf32>
    %19 = arith.addf %16, %18 : vector<2x32xf32>
    %c0_16 = arith.constant 0 : index
    %c0_17 = arith.constant 0 : index
    %c0_18 = arith.constant 0 : index
    %20 = vector.load %arg7[%c0_16, %c0_17, %c0_18] : memref<2x1x32xf32, #tpu.memory_space<vmem>>, vector<2x1x32xf32>
    %21 = vector.shape_cast %20 : vector<2x1x32xf32> to vector<2x32xf32>
    %22 = vector.shape_cast %19 : vector<2x32xf32> to vector<2x1x32xf32>
    tpu.vector_store %arg7[%c0_16, %c0_17, %c0_18], %22 {strides = array<i32>} : memref<2x1x32xf32, #tpu.memory_space<vmem>>, vector<2x1x32xf32>,
    return
  }
  func.func @transform_0(%arg0: i32) -> (i32, i32, i32) {
    %c0_i32 = arith.constant 0 : i32
    %c0_i32_0 = arith.constant 0 : i32
    %c0_i32_1 = arith.constant 0 : i32
    return %arg0, %c0_i32, %c0_i32_0 : i32, i32, i32
  }
  func.func @transform_1(%arg0: i32) -> (i32, i32) {
    %c0_i32 = arith.constant 0 : i32
    %c0_i32_0 = arith.constant 0 : i32
    %c0_i32_1 = arith.constant 0 : i32
    return %c0_i32, %c0_i32_0 : i32, i32
  }
  func.func @transform_2(%arg0: i32) -> (i32, i32) {
    %c0_i32 = arith.constant 0 : i32
    %c0_i32_0 = arith.constant 0 : i32
    %c0_i32_1 = arith.constant 0 : i32
    return %c0_i32, %c0_i32_0 : i32, i32
  }
  func.func @transform_3(%arg0: i32) -> (i32, i32) {
    %c0_i32 = arith.constant 0 : i32
    %c0_i32_0 = arith.constant 0 : i32
    %c0_i32_1 = arith.constant 0 : i32
    return %c0_i32, %c0_i32_0 : i32, i32
  }
  func.func @transform_4(%arg0: i32) -> (i32, i32) {
    %c0_i32 = arith.constant 0 : i32
    %c0_i32_0 = arith.constant 0 : i32
    %c0_i32_1 = arith.constant 0 : i32
    return %c0_i32, %c0_i32_0 : i32, i32
  }
  func.func @transform_5(%arg0: i32) -> (i32, i32) {
    %c0_i32 = arith.constant 0 : i32
    %c0_i32_0 = arith.constant 0 : i32
    %c0_i32_1 = arith.constant 0 : i32
    return %c0_i32, %c0_i32_0 : i32, i32
  }
  func.func @transform_6(%arg0: i32) -> (i32, i32, i32) {
    %c0_i32 = arith.constant 0 : i32
    %c0_i32_0 = arith.constant 0 : i32
    %c0_i32_1 = arith.constant 0 : i32
    return %arg0, %c0_i32, %c0_i32_0 : i32, i32, i32
  }
}

</mosaic_0001>

<bundles_post_ra>
// kernel: tpu_custom_call.1
= control target key start
LH: loop header
LB: loop body
LE: loop exit
PB: predicated region body
PF: predicated region fallthrough
CT: control target
= control target key end

     0   :  { %s740_s0 = inlined_call_operand.vmem [shape: bf16[2,16,256], index: 0, kind: input, shape index: {}]   ;;  %s741_s1 = inlined_call_operand.vmem [shape: bf16[256,16], index: 1, kind: input, shape index: {}]   ;;  %s742_s2 = inlined_call_operand.vmem [shape: f32[16,16], index: 2, kind: input, shape index: {}]   ;;  %s743_s3 = inlined_call_operand.vmem [shape: f32[16,16], index: 3, kind: input, shape index: {}]   ;;  %s744_s4 = inlined_call_operand.vmem [shape: f32[16,32], index: 4, kind: input, shape index: {}]   ;;  %s745_s5 = inlined_call_operand.vmem [shape: f32[16,32], index: 5, kind: input, shape index: {}]   ;;  %s746_s6 = inlined_call_operand.hbm [shape: f32[2,1,32], index: 6, kind: output, shape index: {}]  }
   0x1   :  { %v550_v0 = vld [vmem:[%s741_s1 + $0x78] sm:$0xff]   ;;  %v552_v2 = vld [vmem:[%s741_s1 + $0x70] sm:$0xff]   ;;  %v554_v4 = vld [vmem:[%s741_s1 + $0x68] sm:$0xff]  }
   0x2   :  { %v551_v1 = vld [vmem:[%s741_s1 + $0x38] sm:$0xff]   ;;  %496 = vmatprep.subr.bf16.mxu0 %v550_v0  ;;  %v553_v3 = vld [vmem:[%s741_s1 + $0x30] sm:$0xff]   ;;  %v555_v5 = vld [vmem:[%s741_s1 + $0x28] sm:$0xff]  }
   0x3   :  { %497 = vmatpush3.bf16.msra.mxu0 %v551_v1  ;;  %v556_v6 = vld [vmem:[%s741_s1 + $0x60] sm:$0xff]   ;;  %v558_v8 = vld [vmem:[%s741_s1 + $0x58] sm:$0xff]   ;;  %v560_v10 = vld [vmem:[%s741_s1 + $0x50] sm:$0xff]  }
   0x4   :  { %498 = vmatprep.subr.bf16.mxu0 %v552_v2  ;;  %v557_v7 = vld [vmem:[%s741_s1 + $0x20] sm:$0xff]   ;;  %v559_v9 = vld [vmem:[%s741_s1 + $0x18] sm:$0xff]  }
   0x5   :  { %v568_v11 = vld [vmem:[%s740_s0 + $0x4] ss:$8 sps:$4 sm:$0xff]  }
   0x7   :  { %499 = vmatpush3.bf16.msra.mxu0 %v553_v3 }
   0x8   :  { %500 = vmatprep.subr.bf16.mxu0 %v554_v4 }
   0xb   :  { %501 = vmatpush3.bf16.msra.mxu0 %v555_v5 }
   0xc   :  { %502 = vmatprep.subr.bf16.mxu0 %v556_v6 }
   0xf   :  { %503 = vmatpush3.bf16.msra.mxu0 %v557_v7 }
  0x10   :  { %504 = vmatprep.subr.bf16.mxu0 %v558_v8 }
  0x11   :  { %11 = vsyncpa [#allocation3], 0  ;;  %v561_v12 = vld [vmem:[%s741_s1 + $0x10] sm:$0xff]   ;;  %209 = vmatprep.mubr.bf16.mxu0 %v568_v11  ;;  %v562_v13 = vld [vmem:[%s741_s1 + $0x48] sm:$0xff]   ;;  %v594_v21 = vmov 0.0   ;;  %vm595_vm0 = vmmov 0  }
  0x12   :  { %v563_v14 = vld [vmem:[%s741_s1 + $0x8] sm:$0xff]   ;;  %v564_v15 = vld [vmem:[%s741_s1 + $0x40] sm:$0xff]   ;;  %v569_v18 = vld [vmem:[%s740_s0 + $0x14] ss:$8 sps:$4 sm:$0xff]   ;;  %530 = vmatprep.subr.mxu1 %v594_v21  ;;  %534 = vmatprep.mubr.msk.f32.mxu1 %vm595_vm0, %v594_v21  ;;  %vm232_vm1 = vcmask 130048   ;;  %vm281_vm2 = vcmask 1041409  }
  0x13   :  { %505 = vmatpush3.bf16.msra.mxu0 %v559_v9  ;;  %v565_v16 = vld [vmem:[%s741_s1] sm:$0xff]   ;;  %v571_v19 = vld [vmem:[%s740_s0 + $0x10] ss:$8 sps:$4 sm:$0xff]   ;;  %v278_v20 = vld [vmem:[%s745_s5 + $0x8] sm:$0xff]  ;;  %vm455_vm3 = vcmask 253952  }
  0x14   :  { %506 = vmatprep.subr.bf16.mxu0 %v560_v10  ;;  %v566_v17 = vld [vmem:[%s740_s0] ss:$8 sps:$4 sm:$0xff]   ;;  %531 = vmatpush3.msra.mxu1 %v278_v20 }
  0x15   :  { %v277_v22 = vld [vmem:[%s745_s5] sm:$0xff]  ;;  %532 = vmatprep.subr.mxu1 %v594_v21  ;;  %v227_v31 = vld [vmem:[%s742_s2 + $0x8] sm:$0xff] }
  0x16   :  { %533 = vmatpush3.msra.mxu1 %v277_v22  ;;  %v226_v26 = vld [vmem:[%s742_s2] sm:$0xff]  ;;  %v252_v32 = vld [vmem:[%s743_s3 + $0x8] sm:$0xff] }
  0x17   :  { %507 = vmatpush3.bf16.msra.mxu0 %v561_v12  ;;  %537 = vmatprep.subr.mxu1 %v594_v21  ;;  %v251_v27 = vld [vmem:[%s743_s3] sm:$0xff] }
  0x18   :  { %508 = vmatprep.subr.bf16.mxu0 %v562_v13  ;;  %v275_v20 = vld [vmem:[%s744_s4] sm:$0xff] }
  0x1b   :  { %509 = vmatpush3.bf16.msra.mxu0 %v563_v14 }
  0x1c   :  { %510 = vmatprep.subr.bf16.mxu0 %v564_v15 }
  0x1f   :  { %511 = vmatpush3.bf16.msra.mxu0 %v565_v16 }
  0x22   :  { %210 = vmatmul.mubr.bf16.vlgmr.msra.gmra.mxu0 %v566_v17  ;;  %v276_v17 = vld [vmem:[%s744_s4 + $0x8] sm:$0xff]  ;;  %s597_s4 = smov [#allocation2]  }
  0x23   :  { %217 = vmatprep.mubr.bf16.mxu0 %v569_v18  ;;  %s463_s24 = sshll.u32 %s597_s4, 4  ;;  %s464_s24 = int_to_ptr.vmem [resolvable:$true] %s463_s24 }
  0x24   :  { %s572_s25 = scalar_lea.vmem %s464_s24, 32  ;;  %p577_p1 = scmp.lt.s32.totalorder %s464_s24, %s464_s24 }
  0x25   :  { %p573_p0 = scmp.ne.s32.totalorder %s464_s24, %s572_s25  ;;  %p578_p2 = scmp.lt.s32.totalorder %s572_s25, %s572_s25 }
  0x27   :  { %p579_p3 = por %p578_p2, %p577_p1 }
  0x29   :  { %p580_p4 = pnand %p579_p3, %p573_p0 }
  0x2a   :  { %218 = vmatmul.mubr.bf16.gmra.mxu0 %v571_v19 }
  0xe2   :  { %v512_v23 = vpop.f32.mrf.mxu0 }
  0xe4   :  { %v513_v24 = vpop.f32.mrf.mxu0 }
  0xe5   :  { %v514_v25 = vadd.f32 %v513_v24, %v512_v23  ;;  %v596_v24 = vmov 1966171168  }
  0xe6   :  { %v515_v28 = vpop.f32.mrf.mxu0 }
  0xe7   :  { %v228_v29 = vmul.f32 %v514_v25, %v226_v26  ;;  %v253_v33 = vmul.f32 %v514_v25, %v251_v27  ;;  %v432_v25 = vunpack.c.l.s4 %v596_v24 }
  0xe8   :  { %v516_v30 = vpop.f32.mrf.mxu0 }
  0xe9   :  { %v517_v34 = vadd.f32 %v516_v30, %v515_v28  ;;  %v233_v38 = vsel %vm232_vm1, %v228_v29, 0.0  ;;  %v257_v40 = vsel %vm232_vm1, %v253_v33, 0.0 }
  0xea   :  { %v518_v35 = vpop.f32.mrf.mxu0 }
  0xeb   :  { %v229_v36 = vmul.f32 %v517_v34, %v227_v31  ;;  %v254_v37 = vmul.f32 %v517_v34, %v252_v32 }
  0xec   :  { %v519_v39 = vpop.f32.mrf.mxu0 }
  0xed   :  { %v234_v41 = vsel %vm232_vm1, %v229_v36, 0.0  ;;  %v258_v42 = vsel %vm232_vm1, %v254_v37, 0.0  ;;  %v520_v43 = vadd.f32 %v519_v39, %v518_v35 }
  0xee   :  { %v235_v44 = vadd.f32 %v234_v41, %v233_v38  ;;  %v259_v45 = vadd.f32 %v258_v42, %v257_v40  ;;  %v521_v46 = vpop.f32.mrf.mxu0 }
  0xef   :  { %v230_v49 = vmul.f32 %v520_v43, %v226_v26  ;;  %v255_v50 = vmul.f32 %v520_v43, %v251_v27  ;;  %v434_v26 = vlaneseq  ;;  %v433_v27 = vunpack.c.0.s8 %v432_v25 }
  0xf0   :  { %v260_v47 = vrot.slane %v259_v45, 4  ;;  %v522_v48 = vpop.f32.mrf.mxu0  ;;  %v236_v52 = vrot.slane %v235_v44, 4 }
  0xf1   :  { %v523_v51 = vadd.f32 %v522_v48, %v521_v46  ;;  %v242_v56 = vsel %vm232_vm1, %v230_v49, 0.0  ;;  %v266_v57 = vsel %vm232_vm1, %v255_v50, 0.0  ;;  %v435_v28 = vshrl.u32 %v434_v26, 7 }
  0xf2   :  { %v261_v53 = vadd.f32 %v260_v47, %v259_v45  ;;  %v237_v60 = vadd.f32 %v236_v52, %v235_v44 }
  0xf3   :  { %v231_v54 = vmul.f32 %v523_v51, %v227_v31  ;;  %v256_v55 = vmul.f32 %v523_v51, %v252_v32  ;;  %v436_v31 = vsub.s32 %v433_v27, %v435_v28 }
  0xf4   :  { %v262_v61 = vrot.slane %v261_v53, 2  ;;  %v238_v2 = vrot.slane %v237_v60, 2 }
  0xf5   :  { %v243_v58 = vsel %vm232_vm1, %v231_v54, 0.0  ;;  %v267_v59 = vsel %vm232_vm1, %v256_v55, 0.0 }
  0xf6   :  { %v244_v62 = vadd.f32 %v243_v58, %v242_v56  ;;  %v268_v63 = vadd.f32 %v267_v59, %v266_v57  ;;  %v263_v3 = vadd.f32 %v262_v61, %v261_v53  ;;  %v239_v8 = vadd.f32 %v238_v2, %v237_v60 }
  0xf8   :  { %v245_v0 = vrot.slane %v244_v62, 4  ;;  %v269_v1 = vrot.slane %v268_v63, 4  ;;  %v264_v11 = vrot.slane %v263_v3, 1  ;;  %v240_v14 = vrot.slane %v239_v8, 1 }
  0xfa   :  { %v246_v4 = vadd.f32 %v245_v0, %v244_v62  ;;  %v270_v5 = vadd.f32 %v269_v1, %v268_v63  ;;  %v265_v15 = vadd.f32 %v264_v11, %v263_v3  ;;  %v241_v22 = vadd.f32 %v240_v14, %v239_v8 }
  0xfc   :  { %v247_v6 = vrot.slane %v246_v4, 2  ;;  %v271_v7 = vrot.slane %v270_v5, 2 }
  0xfe   :  { %v248_v9 = vadd.f32 %v247_v6, %v246_v4  ;;  %v272_v10 = vadd.f32 %v271_v7, %v270_v5 }
 0x100   :  { %v249_v12 = vrot.slane %v248_v9, 1  ;;  %v273_v13 = vrot.slane %v272_v10, 1 }
 0x102   :  { %v274_v16 = vadd.f32 %v273_v13, %v272_v10  ;;  %v250_v19 = vadd.f32 %v249_v12, %v248_v9 }
 0x104   :  { %v282_v18 = vsel %vm281_vm2, %v274_v16, %v265_v15  ;;  %v357_v23 = vsel %vm281_vm2, %v250_v19, %v241_v22 }
 0x105   :  { %535 = vmatmul.mubr.msk.f32.vlgmr.msra.gmra.mxu1 %vm232_vm1, %v282_v18 }
 0x106   :  { %538 = vmatpush3.msra.mxu1 %v276_v17  ;;  %541 = vmatprep.mubr.msk.f32.mxu1 %vm595_vm0, %v594_v21 }
 0x107   :  { %539 = vmatprep.subr.mxu1 %v594_v21 }
 0x108   :  { %540 = vmatpush3.msra.mxu1 %v275_v20 }
 0x109   :  { %542 = vmatmul.mubr.msk.f32.vlgmr.msra.gmra.mxu1 %vm232_vm1, %v357_v23 }
 0x1c5   :  { %v351_v29 = vpop.f32.mrf.mxu1 }
 0x1c7   :  { %v536_v30 = vpop.f32.mrf.mxu1 }
 0x1c9   :  { %v426_v32 = vpop.f32.mrf.mxu1 }
 0x1ca   :  { %v427_v33 = vadd.f32 %v426_v32, %v351_v29 }
 0x1cb   :  { %v543_v34 = vpop.f32.mrf.mxu1 }
 0x1cc   :  { %v437_v35 = vrot.slane %v427_v33, %v436_v31 }
 0x1ce   :  { %v438_v21 = vcombine.high %v437_v35, %v437_v35  ;;  %v445_v36 = vrot.slane %v437_v35, %v436_v31 }
 0x1d0   :  { %v452_v37 = vrot.slane %v438_v21, %v436_v31  ;;  %456 = vst.msk [vmem:[#allocation2] sm:$0x1] %vm455_vm3, %v445_v36 }
 0x1d2   :  { %457 = vst.msk [vmem:[#allocation2 + $0x1] sm:$0x1] %vm455_vm3, %v452_v37 }
 0x1d3   :  { %583 = shalt.err (!%p580_p4)
}
 0x1d4   :  { %s598_s26 = smov 16   ;;  %s599_s27 = smov 1  }
 0x1d5   :  { %469 = dma.vmem_to_hbm [thread:$0]  %s464_s24, 32, %s746_s6, [#allocation3], %s598_s26, %s598_s26, %s599_s27  }
 0x1d6   :  { %592 = dma.done.wait [#allocation3], 32  }
 0x1d7   :  { %593 = vsyncadd [#allocation3], 4294967264 }
 0x1d8   :  { %473 = vsyncpa [#allocation3], 1 }

</bundles_post_ra>
